<compile_context>
chip_gen: v7x
topology: tpu7x:2x2x1
jax: 0.10.0
libtpu: 0.0.40
codegen_flags: <defaults>
</compile_context>

<pallas_src>
import jax
import jax.numpy as jnp
import numpy as np
from jax.experimental import pallas as pl
from jax.experimental.pallas import tpu as pltpu

CIN = 52
COUT = 20
K = 3


def _conv_t_max_kernel(x_ref, halo_ref, w_ref, b_ref, o_ref):
    # x_ref:    (CIN, TN)     input slab for (batch b, length-tile j)
    # halo_ref: (CIN, K-1)    the K-1 input columns just past this tile
    # w_ref:    (K, COUT, CIN) flipped / transposed conv-transpose weights
    # b_ref:    (COUT, 1)      bias
    # o_ref:    (COUT, TN)     resident max-over-batch accumulator
    b_idx = pl.program_id(1)

    x = x_ref[...]        # (CIN, TN)
    halo = halo_ref[...]  # (CIN, K-1)

    # Tap jj contributes  out[:, s] += Wf_jj @ x_pad[:, s + jj].
    # jj == 0 is lane-aligned; jj > 0 is a left-shift of the (small) dot
    # output with the last jj columns coming from the halo columns.
    y = jnp.dot(w_ref[0], x, preferred_element_type=jnp.float32)
    for jj in range(1, K):
        yk = jnp.dot(w_ref[jj], x, preferred_element_type=jnp.float32)
        hk = jnp.dot(w_ref[jj], halo, preferred_element_type=jnp.float32)
        y = y + jnp.concatenate([yk[:, jj:], hk[:, :jj]], axis=-1)

    @pl.when(b_idx == 0)
    def _():
        o_ref[...] = y

    @pl.when(b_idx != 0)
    def _():
        o_ref[...] = jnp.maximum(o_ref[...], y)

    # Bias is batch-invariant -> add once, after the max.
    @pl.when(b_idx == pl.num_programs(1) - 1)
    def _():
        o_ref[...] = o_ref[...] + b_ref[...]


def conv_transpose1d_max(x, weight, bias, *, tn=None):
    """x: (B, Cin, L) f32, weight: (Cin, Cout, K) f32, bias: (Cout,) f32.

    Returns max over batch of ConvTranspose1d(x) -> (Cout, L + K - 1).
    """
    B, cin, L = x.shape
    assert cin == CIN
    lout = L + K - 1

    # Output-length tile (lanes). Big tiles amortize per-step overhead; even
    # tn=8192 keeps the per-step blocks at a few MiB (fits every generation).
    if tn is None:
        tn = min(8192, ((lout + 127) // 128) * 128)
    assert tn % 128 == 0
    lout_pad = ((lout + tn - 1) // tn) * tn
    ntiles = lout_pad // tn

    x = x.astype(jnp.float32)

    # Single pad pass: x_main[b, ci, K-1 + s] = x[b, ci, s], zeros elsewhere.
    x_main = jnp.zeros((B, CIN, lout_pad), dtype=jnp.float32)
    x_main = x_main.at[:, :, K - 1:K - 1 + L].set(x)

    # Tiny right-halo side input: halo[b, j, :, h] = x_pad[b, :, (j+1)*tn + h]
    # (zero past the end of the padded length).
    idx = (jnp.arange(ntiles)[:, None] + 1) * tn + jnp.arange(K - 1)[None, :]
    valid = (idx < lout_pad).astype(jnp.float32)          # (ntiles, K-1)
    idx_c = jnp.minimum(idx, lout_pad - 1)
    halo = x_main[:, :, idx_c]                            # (B, CIN, ntiles, K-1)
    halo = jnp.transpose(halo, (0, 2, 1, 3)) * valid[None, :, None, :]

    # PyTorch ConvTranspose1d weight is (Cin, Cout, K).
    # w_f[jj, co, ci] = weight[ci, co, K-1-jj]  (flip + transpose).
    w_f = jnp.transpose(weight[:, :, ::-1].astype(jnp.float32), (2, 1, 0))
    b2d = bias.reshape(COUT, 1).astype(jnp.float32)

    flops = int(2 * B * ntiles * K * COUT * CIN * tn)
    bytes_accessed = int((x_main.size + halo.size + w_f.size) * 4
                         + COUT * lout_pad * 4)

    out_padded = pl.pallas_call(
        _conv_t_max_kernel,
        out_shape=jax.ShapeDtypeStruct((COUT, lout_pad), jnp.float32),
        grid=(ntiles, B),
        in_specs=[
            # x block: (CIN, tn), batch dim squeezed.
            pl.BlockSpec((None, CIN, tn), lambda j, b: (b, 0, j)),
            # halo block: (CIN, K-1), batch & tile dims squeezed.
            pl.BlockSpec((None, None, CIN, K - 1), lambda j, b: (b, j, 0, 0)),
            # weights / bias: constant block index -> fetched once.
            pl.BlockSpec((K, COUT, CIN), lambda j, b: (0, 0, 0)),
            pl.BlockSpec((COUT, 1), lambda j, b: (0, 0)),
        ],
        # Output block constant across the batch axis -> resident accumulator.
        out_specs=pl.BlockSpec((COUT, tn), lambda j, b: (0, j)),
        compiler_params=pltpu.CompilerParams(
            dimension_semantics=("parallel", "arbitrary")),
        cost_estimate=pl.CostEstimate(
            flops=flops, transcendentals=0, bytes_accessed=bytes_accessed),
    )(x_main, halo, w_f, b2d)

    return out_padded[:, :lout]


def _reference(x, weight, bias):
    """Pure-JAX reference of ConvTranspose1d(stride=1) + max over batch."""
    B, cin, L = x.shape
    lout = L + K - 1
    out = jnp.zeros((B, COUT, lout), dtype=jnp.float32)
    for k in range(K):
        out = out.at[:, :, k:k + L].add(
            jnp.einsum("bil,io->bol", x, weight[:, :, k]))
    out = out + bias[None, :, None]
    return jnp.max(out, axis=0)


if __name__ == "__main__":
    key = jax.random.PRNGKey(0)
    kx, kw, kb, kx2 = jax.random.split(key, 4)

    # Deterministic "trained" parameters (PyTorch-style uniform init bound).
    bound = 1.0 / np.sqrt(CIN * K)
    weight = jax.random.uniform(
        kw, (CIN, COUT, K), minval=-bound, maxval=bound, dtype=jnp.float32)
    bias = jax.random.uniform(
        kb, (COUT,), minval=-bound, maxval=bound, dtype=jnp.float32)

    # Case 1: small, single length tile (auto tn), exercises lane padding
    # and the final slice back to lout.
    B, L = 4, 123  # Lout = 125 -> tn = 128, ntiles = 1
    x = jax.random.normal(kx, (B, CIN, L), dtype=jnp.float32)
    out = jax.block_until_ready(conv_transpose1d_max(x, weight, bias))
    ref = _reference(x, weight, bias)
    assert out.shape == (COUT, L + K - 1), out.shape
    np.testing.assert_allclose(np.asarray(out), np.asarray(ref),
                               rtol=1e-4, atol=1e-5)

    # Case 2: multi-tile parallel grid (forced small tn) -> exercises the
    # cross-tile halo path and the batch max-accumulator across tiles.
    B2, L2 = 2, 300  # Lout = 302 -> tn = 128, lout_pad = 384, ntiles = 3
    x2 = jax.random.normal(kx2, (B2, CIN, L2), dtype=jnp.float32)
    out2 = jax.block_until_ready(conv_transpose1d_max(x2, weight, bias, tn=128))
    ref2 = _reference(x2, weight, bias)
    assert out2.shape == (COUT, L2 + K - 1), out2.shape
    np.testing.assert_allclose(np.asarray(out2), np.asarray(ref2),
                               rtol=1e-4, atol=1e-5)

    print("KERNEL_OK")
</pallas_src>

<mosaic_0001>
module attributes {stable_mosaic.version = 11 : i64} {
  func.func @_conv_t_max_kernel(%arg0: i32, %arg1: i32, %arg2: memref<1x52x128xf32, #tpu.memory_space<vmem>>, %arg3: memref<1x1x52x2xf32, #tpu.memory_space<vmem>>, %arg4: memref<3x20x52xf32, #tpu.memory_space<vmem>>, %arg5: memref<20x1xf32, #tpu.memory_space<vmem>>, %arg6: memref<20x128xf32, #tpu.memory_space<vmem>>) attributes {dimension_semantics = [#tpu.dimension_semantics<parallel>, #tpu.dimension_semantics<arbitrary>], iteration_bounds = array<i64: 1, 4>, scalar_prefetch = 0 : i64, scratch_operands = 0 : i64, tpu.core_type = #tpu.core_type<tc>, window_params = [{transform_indices = @transform_0, window_bounds = array<i64: 1, 52, 128>}, {transform_indices = @transform_1, window_bounds = array<i64: 1, 1, 52, 2>}, {pipeline_mode = #tpu.pipeline_mode<synchronous>, transform_indices = @transform_2, window_bounds = array<i64: 3, 20, 52>}, {pipeline_mode = #tpu.pipeline_mode<synchronous>, transform_indices = @transform_3, window_bounds = array<i64: 20, 1>}, {transform_indices = @transform_4, window_bounds = array<i64: 20, 128>}]} {
    %c0 = arith.constant 0 : index
    %c0_0 = arith.constant 0 : index
    %c0_1 = arith.constant 0 : index
    %0 = vector.load %arg2[%c0, %c0_0, %c0_1] : memref<1x52x128xf32, #tpu.memory_space<vmem>>, vector<1x52x128xf32>
    %1 = vector.shape_cast %0 : vector<1x52x128xf32> to vector<52x128xf32>
    %c0_2 = arith.constant 0 : index
    %c0_3 = arith.constant 0 : index
    %c0_4 = arith.constant 0 : index
    %c0_5 = arith.constant 0 : index
    %2 = vector.load %arg3[%c0_2, %c0_3, %c0_4, %c0_5] : memref<1x1x52x2xf32, #tpu.memory_space<vmem>>, vector<1x1x52x2xf32>
    %3 = vector.shape_cast %2 : vector<1x1x52x2xf32> to vector<52x2xf32>
    %c0_6 = arith.constant 0 : index
    %c0_7 = arith.constant 0 : index
    %c0_8 = arith.constant 0 : index
    %4 = vector.load %arg4[%c0_6, %c0_7, %c0_8] : memref<3x20x52xf32, #tpu.memory_space<vmem>>, vector<1x20x52xf32>
    %5 = vector.shape_cast %4 : vector<1x20x52xf32> to vector<20x52xf32>
    %cst = arith.constant dense<0.000000e+00> : vector<20x128xf32>
    %6 = tpu.matmul %5, %1, %cst {dimension_numbers = #tpu.dot_dimension_numbers<[1], [0], [0], [1], [0, 0, 1, 1], [], []>} : vector<20x52xf32>, vector<52x128xf32>, vector<20x128xf32> -> vector<20x128xf32>
    %c1 = arith.constant 1 : index
    %c0_9 = arith.constant 0 : index
    %c0_10 = arith.constant 0 : index
    %7 = vector.load %arg4[%c1, %c0_9, %c0_10] : memref<3x20x52xf32, #tpu.memory_space<vmem>>, vector<1x20x52xf32>
    %8 = vector.shape_cast %7 : vector<1x20x52xf32> to vector<20x52xf32>
    %cst_11 = arith.constant dense<0.000000e+00> : vector<20x128xf32>
    %9 = tpu.matmul %8, %1, %cst_11 {dimension_numbers = #tpu.dot_dimension_numbers<[1], [0], [0], [1], [0, 0, 1, 1], [], []>} : vector<20x52xf32>, vector<52x128xf32>, vector<20x128xf32> -> vector<20x128xf32>
    %c1_12 = arith.constant 1 : index
    %c0_13 = arith.constant 0 : index
    %c0_14 = arith.constant 0 : index
    %10 = vector.load %arg4[%c1_12, %c0_13, %c0_14] : memref<3x20x52xf32, #tpu.memory_space<vmem>>, vector<1x20x52xf32>
    %11 = vector.shape_cast %10 : vector<1x20x52xf32> to vector<20x52xf32>
    %cst_15 = arith.constant dense<0.000000e+00> : vector<20x2xf32>
    %12 = tpu.matmul %11, %3, %cst_15 {dimension_numbers = #tpu.dot_dimension_numbers<[1], [0], [0], [1], [0, 0, 1, 1], [], []>} : vector<20x52xf32>, vector<52x2xf32>, vector<20x2xf32> -> vector<20x2xf32>
    %13 = vector.extract_strided_slice %9 {offsets = [0, 1], sizes = [20, 127], strides = [1, 1]} : vector<20x128xf32> to vector<20x127xf32>
    %14 = vector.extract_strided_slice %12 {offsets = [0, 0], sizes = [20, 1], strides = [1, 1]} : vector<20x2xf32> to vector<20x1xf32>
    %15 = tpu.concatenate %13, %14 in 1 : vector<20x127xf32>, vector<20x1xf32> -> vector<20x128xf32>
    %16 = arith.addf %6, %15 : vector<20x128xf32>
    %c2 = arith.constant 2 : index
    %c0_16 = arith.constant 0 : index
    %c0_17 = arith.constant 0 : index
    %17 = vector.load %arg4[%c2, %c0_16, %c0_17] : memref<3x20x52xf32, #tpu.memory_space<vmem>>, vector<1x20x52xf32>
    %18 = vector.shape_cast %17 : vector<1x20x52xf32> to vector<20x52xf32>
    %cst_18 = arith.constant dense<0.000000e+00> : vector<20x128xf32>
    %19 = tpu.matmul %18, %1, %cst_18 {dimension_numbers = #tpu.dot_dimension_numbers<[1], [0], [0], [1], [0, 0, 1, 1], [], []>} : vector<20x52xf32>, vector<52x128xf32>, vector<20x128xf32> -> vector<20x128xf32>
    %c2_19 = arith.constant 2 : index
    %c0_20 = arith.constant 0 : index
    %c0_21 = arith.constant 0 : index
    %20 = vector.load %arg4[%c2_19, %c0_20, %c0_21] : memref<3x20x52xf32, #tpu.memory_space<vmem>>, vector<1x20x52xf32>
    %21 = vector.shape_cast %20 : vector<1x20x52xf32> to vector<20x52xf32>
    %cst_22 = arith.constant dense<0.000000e+00> : vector<20x2xf32>
    %22 = tpu.matmul %21, %3, %cst_22 {dimension_numbers = #tpu.dot_dimension_numbers<[1], [0], [0], [1], [0, 0, 1, 1], [], []>} : vector<20x52xf32>, vector<52x2xf32>, vector<20x2xf32> -> vector<20x2xf32>
    %23 = vector.extract_strided_slice %19 {offsets = [0, 2], sizes = [20, 126], strides = [1, 1]} : vector<20x128xf32> to vector<20x126xf32>
    %24 = tpu.concatenate %23, %22 in 1 : vector<20x126xf32>, vector<20x2xf32> -> vector<20x128xf32>
    %25 = arith.addf %16, %24 : vector<20x128xf32>
    %c0_i32 = arith.constant 0 : i32
    %26 = arith.cmpi eq, %arg1, %c0_i32 : i32
    %27 = arith.extui %26 : i1 to i32
    %c0_i32_23 = arith.constant 0 : i32
    %28 = arith.cmpi ne, %27, %c0_i32_23 : i32
    scf.if %28 {
      %c0_27 = arith.constant 0 : index
      %c0_28 = arith.constant 0 : index
      %35 = vector.load %arg6[%c0_27, %c0_28] : memref<20x128xf32, #tpu.memory_space<vmem>>, vector<20x128xf32>
      tpu.vector_store %arg6[%c0_27, %c0_28], %25 {strides = array<i32>} : memref<20x128xf32, #tpu.memory_space<vmem>>, vector<20x128xf32>,
    } else {
    }
    %c0_i32_24 = arith.constant 0 : i32
    %29 = arith.cmpi ne, %arg1, %c0_i32_24 : i32
    %30 = arith.extui %29 : i1 to i32
    %c0_i32_25 = arith.constant 0 : i32
    %31 = arith.cmpi ne, %30, %c0_i32_25 : i32
    scf.if %31 {
      %c0_27 = arith.constant 0 : index
      %c0_28 = arith.constant 0 : index
      %35 = vector.load %arg6[%c0_27, %c0_28] : memref<20x128xf32, #tpu.memory_space<vmem>>, vector<20x128xf32>
      %36 = arith.maximumf %35, %25 : vector<20x128xf32>
      %c0_29 = arith.constant 0 : index
      %c0_30 = arith.constant 0 : index
      %37 = vector.load %arg6[%c0_29, %c0_30] : memref<20x128xf32, #tpu.memory_space<vmem>>, vector<20x128xf32>
      tpu.vector_store %arg6[%c0_29, %c0_30], %36 {strides = array<i32>} : memref<20x128xf32, #tpu.memory_space<vmem>>, vector<20x128xf32>,
    } else {
    }
    %c3_i32 = arith.constant 3 : i32
    %32 = arith.cmpi eq, %arg1, %c3_i32 : i32
    %33 = arith.extui %32 : i1 to i32
    %c0_i32_26 = arith.constant 0 : i32
    %34 = arith.cmpi ne, %33, %c0_i32_26 : i32
    scf.if %34 {
      %c0_27 = arith.constant 0 : index
      %c0_28 = arith.constant 0 : index
      %35 = vector.load %arg6[%c0_27, %c0_28] : memref<20x128xf32, #tpu.memory_space<vmem>>, vector<20x128xf32>
      %c0_29 = arith.constant 0 : index
      %c0_30 = arith.constant 0 : index
      %36 = vector.load %arg5[%c0_29, %c0_30] : memref<20x1xf32, #tpu.memory_space<vmem>>, vector<20x1xf32>
      %37 = vector.broadcast %36 : vector<20x1xf32> to vector<20x128xf32>
      %38 = arith.addf %35, %37 : vector<20x128xf32>
      %c0_31 = arith.constant 0 : index
      %c0_32 = arith.constant 0 : index
      %39 = vector.load %arg6[%c0_31, %c0_32] : memref<20x128xf32, #tpu.memory_space<vmem>>, vector<20x128xf32>
      tpu.vector_store %arg6[%c0_31, %c0_32], %38 {strides = array<i32>} : memref<20x128xf32, #tpu.memory_space<vmem>>, vector<20x128xf32>,
    } else {
    }
    return
  }
  func.func @transform_0(%arg0: i32, %arg1: i32) -> (i32, i32, i32) {
    %c0_i32 = arith.constant 0 : i32
    %c0_i32_0 = arith.constant 0 : i32
    return %arg1, %c0_i32, %arg0 : i32, i32, i32
  }
  func.func @transform_1(%arg0: i32, %arg1: i32) -> (i32, i32, i32, i32) {
    %c0_i32 = arith.constant 0 : i32
    %c0_i32_0 = arith.constant 0 : i32
    %c0_i32_1 = arith.constant 0 : i32
    return %arg1, %arg0, %c0_i32, %c0_i32_0 : i32, i32, i32, i32
  }
  func.func @transform_2(%arg0: i32, %arg1: i32) -> (i32, i32, i32) {
    %c0_i32 = arith.constant 0 : i32
    %c0_i32_0 = arith.constant 0 : i32
    %c0_i32_1 = arith.constant 0 : i32
    %c0_i32_2 = arith.constant 0 : i32
    return %c0_i32, %c0_i32_0, %c0_i32_1 : i32, i32, i32
  }
  func.func @transform_3(%arg0: i32, %arg1: i32) -> (i32, i32) {
    %c0_i32 = arith.constant 0 : i32
    %c0_i32_0 = arith.constant 0 : i32
    %c0_i32_1 = arith.constant 0 : i32
    return %c0_i32, %c0_i32_0 : i32, i32
  }
  func.func @transform_4(%arg0: i32, %arg1: i32) -> (i32, i32) {
    %c0_i32 = arith.constant 0 : i32
    %c0_i32_0 = arith.constant 0 : i32
    return %c0_i32, %arg0 : i32, i32
  }
}

</mosaic_0001>

<bundles_post_ra>
// kernel: tpu_custom_call.1
= control target key start
LH: loop header
LB: loop body
LE: loop exit
PB: predicated region body
PF: predicated region fallthrough
CT: control target
= control target key end

     0   :  { %9 = vsyncpa [#allocation3], 0  ;;  %s1291_s15 = smov 0   ;;  %s1293_s16 = smov 0   ;;  %s1509_s0 = inlined_call_operand.vmem [shape: f32[4,52,128], index: 0, kind: input, shape index: {}]   ;;  %s1510_s1 = inlined_call_operand.vmem [shape: f32[4,1,52,2], index: 1, kind: input, shape index: {}]   ;;  %s1511_s2 = inlined_call_operand.vmem [shape: f32[3,20,52], index: 2, kind: input, shape index: {}]   ;;  %s1512_s3 = inlined_call_operand.vmem [shape: f32[20,1], index: 3, kind: input, shape index: {}]   ;;  %s1513_s4 = inlined_call_operand.hbm [shape: f32[20,128], index: 4, kind: output, shape index: {}]  }
   0x1   :  { %s1295_s17 = smov 0  }
   0x2 LB: > { %s904_s18 = sadd.s32 4294967295, %s1255_s17   ;;  %s24_s19 = sadd.s32 1, %s1251_s16  ;;  %s1255_s17 = sphi %s1295_s17, %s15_s17   ;;  %s1251_s16 = sphi %s1293_s16, %s1516_s16   ;;  %s1247_s15 = sphi %s1291_s15, %s1515_s15  }
   0x3   : > { %p25_p0 = scmp.ge.s32.totalorder %s24_s19, 4  ;;  %p907_p1 = scmp.ge.s32.totalorder %s1255_s17, 1 }
   0x4   : > { %p196_p2 = scmp.lt.s32.totalorder %s1255_s17, 5 }
   0x5   : > { %s1518_s19 = smov (%p25_p0, %s24_s19), 0 }
   0x6   : > { %p197_p3 = pnand %p907_p1, %p196_p2 }
   0x7   : > { %p229_p4 = scmp.lt.s32.totalorder (!%p197_p3), %s1247_s15, 3  ;;  %v1257_v0 = vmov (!%p197_p3), 0.0|0.0   ;;  %vm1258_vm0 = vmmov (!%p197_p3), 0   ;;  %v1259_v1 = vmov (!%p197_p3), 0.0   ;;  %vm277_vm1 = vcmask (!%p197_p3), 1043456   ;;  %v910_v22 = vld [vmem:[%s1511_s2 + $0x18] sm:$0xff] (!%p197_p3) }
   0x8   : > { %200 = sbr.rel (%p197_p3) target bundleno = 576 (0x240), region = 36  ;;  %1108 = vmatprep.subr.bf16.mxu0 (!%p197_p3), %v1257_v0  ;;  %1117 = vmatprep.subr.bf16.mxu1 (!%p197_p3), %v1257_v0  ;;  %vm267_vm2 = vcmask (!%p197_p3), 424960   ;;  %v911_v23 = vld [vmem:[%s1511_s2 + $0x20] sm:$0xff] (!%p197_p3)  ;;  %v912_v24 = vld [vmem:[%s1511_s2 + $0x28] sm:$0xf] (!%p197_p3)  ;;  %v925_v26 = vld [vmem:[%s1511_s2 + $0x30] sm:$0xff] (!%p197_p3) }
   0x9   : > { %1007 = vmatprep.mubr.msk.f32.mxu0 (!%p197_p3), %vm1258_vm0, %v1259_v1  ;;  %1030 = vmatprep.mubr.msk.f32.mxu1 (!%p197_p3), %vm1258_vm0, %v1259_v1  ;;  %v260_v25 = vld [vmem:[%s1511_s2] sm:$0xff] (!%p197_p3)  ;;  %v261_v27 = vld [vmem:[%s1511_s2 + $0x8] sm:$0xff] (!%p197_p3)  ;;  %v926_v28 = vld [vmem:[%s1511_s2 + $0x38] sm:$0xff] (!%p197_p3)  ;;  %s1260_s25 = smov (!%p197_p3), 127   ;;  %s1261_s26 = smov (!%p197_p3), 126   ;;  %vm468_vm3 = vcmask (!%p197_p3), 1039360  }
   0xa   : > { %v262_v29 = vld [vmem:[%s1511_s2 + $0x10] sm:$0xf] (!%p197_p3)  ;;  %v927_v30 = vld [vmem:[%s1511_s2 + $0x40] sm:$0xf] (!%p197_p3)  ;;  %vm758_vm4 = vcmask (!%p197_p3), 1031168   ;;  %p936_p5 = scmp.ne.s32.totalorder (!%p197_p3), %s1247_s15, 0 }
   0xf   : > { %s230_s20 = scalar_select %p229_p4, %s1247_s15, 3 }
  0x11   : > { %s1161_s21 = smul.u32 56, %s230_s20 }
  0x13   : > { %s1323_s24 = scalar_lea.vmem %s1509_s0, %s1161_s21  ;;  %s1328_s27 = scalar_lea.vmem %s1510_s1, %s1161_s21 }
  0x14   : > { %v246_v2 = vld [vmem:[%s1323_s24] sm:$0xff]  ;;  %v247_v3 = vld [vmem:[%s1323_s24 + $0x8] sm:$0xff]  ;;  %v248_v7 = vld [vmem:[%s1323_s24 + $0x10] sm:$0xff] }
  0x15   : > { %v253_v4 = vld [vmem:[%s1328_s27] sm:$0xff]  ;;  %v1109_v5 = vpack.c.bf16 %v247_v3, %v246_v2  ;;  %v254_v6 = vld [vmem:[%s1328_s27 + $0x8] sm:$0xff]  ;;  %v249_v8 = vld [vmem:[%s1323_s24 + $0x18] sm:$0xff] }
  0x16   : > { %v1336_v9 = vpack.c.bf16 %v254_v6, %v253_v4  ;;  %v255_v10 = vld [vmem:[%s1328_s27 + $0x10] sm:$0xff]  ;;  %v256_v11 = vld [vmem:[%s1328_s27 + $0x18] sm:$0xff]  ;;  %v1112_v12 = vpack.c.bf16 %v249_v8, %v248_v7  ;;  %v250_v14 = vld [vmem:[%s1323_s24 + $0x20] sm:$0xff] }
  0x17   : > { %1110 = vmatpush3.bf16.msra.mxu0 %v1109_v5  ;;  %v1342_v13 = vpack.c.bf16 %v256_v11, %v255_v10  ;;  %v251_v15 = vld [vmem:[%s1323_s24 + $0x28] sm:$0xff]  ;;  %v257_v16 = vld [vmem:[%s1328_s27 + $0x20] sm:$0xff]  ;;  %v252_v20 = vld [vmem:[%s1323_s24 + $0x30] sm:$0xf] }
  0x18   : > { %1119 = vmatpush3.bf16.msra.mxu1 %v1336_v9  ;;  %1111 = vmatprep.subr.bf16.mxu0 %v1257_v0  ;;  %v258_v17 = vld [vmem:[%s1328_s27 + $0x28] sm:$0xff]  ;;  %v1115_v18 = vpack.c.bf16 %v251_v15, %v250_v14  ;;  %v1359_v21 = vld [vmem:[%s1328_s27 + $0x30] sm:$0xf] }
  0x19   : > { %1120 = vmatprep.subr.bf16.mxu1 %v1257_v0  ;;  %v1351_v19 = vpack.c.bf16 %v258_v17, %v257_v16 }
  0x1b   : > { %1113 = vmatpush3.bf16.msra.mxu0 %v1112_v12 }
  0x1c   : > { %1122 = vmatpush3.bf16.msra.mxu1 %v1342_v13  ;;  %1114 = vmatprep.subr.bf16.mxu0 %v1257_v0 }
  0x1d   : > { %1123 = vmatprep.subr.bf16.mxu1 %v1257_v0 }
  0x1f   : > { %1116 = vmatpush3.bf16.msra.mxu0 %v1115_v18 }
  0x20   : > { %1125 = vmatpush3.bf16.msra.mxu1 %v1351_v19  ;;  %1005 = vmatprep.subr.mxu0 %v1259_v1 }
  0x21   : > { %1028 = vmatprep.subr.mxu1 %v1259_v1 }
  0x23   : > { %1006 = vmatpush3.msk.msra.mxu0 %vm277_vm1, %v252_v20 }
  0x24   : > { %1029 = vmatpush3.msk.msra.mxu1 %vm277_vm1, %v1359_v21  ;;  %1008 = vmatmul.mubr.msk.f32.vlgmr.msra.gmra.mrb[0].mxu0 %vm267_vm2, %v910_v22 }
  0x25   : > { %1031 = vmatmul.mubr.msk.f32.vlgmr.msra.gmra.mrb[0].mxu1 %vm267_vm2, %v910_v22  ;;  %1126 = vmatprep.subr.bf16.mxu0 %v1257_v0 }
  0x26   : > { %1135 = vmatprep.subr.bf16.mxu1 %v1257_v0  ;;  %1128 = vmatpush3.bf16.msra.mxu0 %v1109_v5 }
  0x27   : > { %1137 = vmatpush3.bf16.msra.mxu1 %v1109_v5  ;;  %1010 = vmatprep.mubr.msk.f32.mxu0 %vm1258_vm0, %v1259_v1 }
  0x28   : > { %1011 = vmatmul.mubr.msk.f32.gmra.mrb[2].mxu0 %vm267_vm2, %v911_v23  ;;  %1129 = vmatprep.subr.bf16.mxu0 %v1257_v0 }
  0x29   : > { %1138 = vmatprep.subr.bf16.mxu1 %v1257_v0  ;;  %1033 = vmatprep.mubr.msk.f32.mxu1 %vm1258_vm0, %v1259_v1 }
  0x2a   : > { %1131 = vmatpush3.bf16.msra.mxu0 %v1112_v12  ;;  %1034 = vmatmul.mubr.msk.f32.gmra.mrb[2].mxu1 %vm267_vm2, %v911_v23 }
  0x2b   : > { %1140 = vmatpush3.bf16.msra.mxu1 %v1112_v12  ;;  %1013 = vmatprep.mubr.msk.f32.mxu0 %vm1258_vm0, %v1259_v1 }
  0x2c   : > { %1014 = vmatmul.mubr.msk.f32.gmra.mrb[4].mxu0 %vm267_vm2, %v912_v24  ;;  %1132 = vmatprep.subr.bf16.mxu0 %v1257_v0 }
  0x2d   : > { %1141 = vmatprep.subr.bf16.mxu1 %v1257_v0  ;;  %1036 = vmatprep.mubr.msk.f32.mxu1 %vm1258_vm0, %v1259_v1 }
  0x2e   : > { %1134 = vmatpush3.bf16.msra.mxu0 %v1115_v18  ;;  %1037 = vmatmul.mubr.msk.f32.gmra.mrb[4].mxu1 %vm267_vm2, %v912_v24 }
  0x2f   : > { %1143 = vmatpush3.bf16.msra.mxu1 %v1115_v18  ;;  %1051 = vmatprep.subr.mxu0 %v1259_v1 }
  0x30   : > { %1074 = vmatprep.subr.mxu1 %v1259_v1  ;;  %1053 = vmatprep.mubr.msk.f32.mxu0 %vm1258_vm0, %v1259_v1 }
  0x31   : > { %1076 = vmatprep.mubr.msk.f32.mxu1 %vm1258_vm0, %v1259_v1 }
  0x32   : > { %1052 = vmatpush3.msk.msra.mxu0 %vm277_vm1, %v252_v20 }
  0x33   : > { %1075 = vmatpush3.msk.msra.mxu1 %vm277_vm1, %v252_v20  ;;  %1054 = vmatmul.mubr.msk.f32.vlgmr.msra.gmra.mrb[6].mxu0 %vm267_vm2, %v260_v25 }
  0x34   : > { %1077 = vmatmul.mubr.msk.f32.vlgmr.msra.gmra.mrb[6].mxu1 %vm267_vm2, %v925_v26  ;;  %1144 = vmatprep.subr.bf16.mxu0 %v1257_v0 }
  0x35   : > { %1153 = vmatprep.subr.bf16.mxu1 %v1257_v0  ;;  %1146 = vmatpush3.bf16.msra.mxu0 %v1336_v9 }
  0x36   : > { %1157 = vmatpush3.bf16.msra.mxu1 %v1336_v9  ;;  %1147 = vmatprep.subr.bf16.mxu0 %v1257_v0 }
  0x37   : > { %1154 = vmatprep.subr.bf16.mxu1 %v1257_v0  ;;  %1056 = vmatprep.mubr.msk.f32.mxu0 %vm1258_vm0, %v1259_v1 }
  0x38   : > { %1079 = vmatprep.mubr.msk.f32.mxu1 %vm1258_vm0, %v1259_v1  ;;  %1057 = vmatmul.mubr.msk.f32.gmra.mrb[8].mxu0 %vm267_vm2, %v261_v27 }
  0x39   : > { %1149 = vmatpush3.bf16.msra.mxu0 %v1342_v13  ;;  %1080 = vmatmul.mubr.msk.f32.gmra.mrb[8].mxu1 %vm267_vm2, %v926_v28 }
  0x3a   : > { %1158 = vmatpush3.bf16.msra.mxu1 %v1342_v13  ;;  %1150 = vmatprep.subr.bf16.mxu0 %v1257_v0 }
  0x3b   : > { %1155 = vmatprep.subr.bf16.mxu1 %v1257_v0  ;;  %1059 = vmatprep.mubr.msk.f32.mxu0 %vm1258_vm0, %v1259_v1 }
  0x3c   : > { %1082 = vmatprep.mubr.msk.f32.mxu1 %vm1258_vm0, %v1259_v1  ;;  %1060 = vmatmul.mubr.msk.f32.gmra.mrb[10].mxu0 %vm267_vm2, %v262_v29 }
  0x3d   : > { %1152 = vmatpush3.bf16.msra.mxu0 %v1351_v19  ;;  %1083 = vmatmul.mubr.msk.f32.gmra.mrb[10].mxu1 %vm267_vm2, %v927_v30 }
  0x3e   : > { %1159 = vmatpush3.bf16.msra.mxu1 %v1351_v19  ;;  %1097 = vmatprep.subr.mxu0 %v1259_v1 }
  0x3f   : > { %1156 = vmatprep.subr.mxu1 %v1259_v1  ;;  %1099 = vmatprep.mubr.msk.f32.mxu0 %vm1258_vm0, %v1259_v1 }
  0x40   : > { %1102 = vmatprep.mubr.msk.f32.mxu1 %vm1258_vm0, %v1259_v1 }
  0x41   : > { %1098 = vmatpush3.msk.msra.mxu0 %vm277_vm1, %v1359_v21 }
  0x42   : > { %1160 = vmatpush3.msk.msra.mxu1 %vm277_vm1, %v1359_v21  ;;  %1100 = vmatmul.mubr.msk.f32.vlgmr.msra.gmra.mrb[12].mxu0 %vm267_vm2, %v925_v26 }
  0x43   : > { %1103 = vmatmul.mubr.msk.f32.vlgmr.msra.gmra.mrb[12].mxu1 %vm267_vm2, %v926_v28 }
  0x44   : > { %1105 = vmatprep.mubr.msk.f32.mxu1 %vm1258_vm0, %v1259_v1 }
  0x47   : > { %1106 = vmatmul.mubr.msk.f32.gmra.mrb[14].mxu1 %vm267_vm2, %v927_v30 }
  0xf7   : > { %v347_v31 = vpop.f32.mrb[0].mxu0 }
  0xf8   : > { %v430_v32 = vpop.f32.mrb[0].mxu1  ;;  %447 = vrot.lane.b32.xlu0 %v347_v31, %s1260_s25  ;;  %v1009_v33 = vpop.f32.mrb[1].mxu0 }
  0xf9   : > { %459 = vrot.lane.b32.xlu1 %v430_v32, %s1260_s25  ;;  %v1032_v34 = vpop.f32.mrb[1].mxu1 }
  0xfb   : > { %v352_v35 = vpop.f32.mrb[2].mxu0 }
  0xfc   : > { %449 = vrot.lane.b32.xlu0 %v352_v35, %s1260_s25  ;;  %v1012_v36 = vpop.f32.mrb[3].mxu0 }
  0xfd   : > { %v435_v37 = vpop.f32.mrb[2].mxu1 }
  0xfe   : > { %v1035_v38 = vpop.f32.mrb[3].mxu1 }
  0xff   : > { %v357_v39 = vpop.f32.mrb[4].mxu0 }
 0x100   : > { %461 = vrot.lane.b32.xlu0 %v435_v37, %s1260_s25  ;;  %451 = vrot.lane.b32.xlu1 %v357_v39, %s1260_s25  ;;  %v1015_v40 = vpop.f32.mrb[5].mxu0 }
 0x101   : > { %v440_v41 = vpop.f32.mrb[4].mxu1 }
 0x102   : > { %v1038_v42 = vpop.f32.mrb[5].mxu1 }
 0x104   : > { %463 = vrot.lane.b32.xlu1 %v440_v41, %s1260_s25 }
 0x106   : > { %v547_v43 = vpop.f32.mrb[6].mxu0 }
 0x107   : > { %v640_v44 = vpop.f32.mrb[6].mxu1  ;;  %v1055_v45 = vpop.f32.mrb[7].mxu0 }
 0x108   : > { %v1078_v46 = vpop.f32.mrb[7].mxu1  ;;  %737 = vrot.lane.b32.xlu0 %v640_v44, %s1261_s26 }
 0x10b   : > { %v552_v47 = vpop.f32.mrb[8].mxu0 }
 0x10c   : > { %v645_v48 = vpop.f32.mrb[8].mxu1  ;;  %v1058_v49 = vpop.f32.mrb[9].mxu0 }
 0x10d   : > { %v1081_v50 = vpop.f32.mrb[9].mxu1  ;;  %739 = vrot.lane.b32.xlu1 %v645_v48, %s1261_s26 }
 0x10f   : > { %v557_v51 = vpop.f32.mrb[10].mxu0 }
 0x110   : > { %v650_v52 = vpop.f32.mrb[10].mxu1  ;;  %v1061_v53 = vpop.f32.mrb[11].mxu0 }
 0x111   : > { %741 = vrot.lane.b32.xlu0 %v650_v52, %s1261_s26  ;;  %v1084_v54 = vpop.f32.mrb[11].mxu1 }
 0x115   : > { %v720_v55 = vpop.f32.mrb[12].mxu0 }
 0x116   : > { %v725_v56 = vpop.f32.mrb[12].mxu1  ;;  %749 = vrot.lane.b32.xlu1 %v720_v55, %s1261_s26  ;;  %v1101_v57 = vpop.f32.mrb[13].mxu0 }
 0x117   : > { %751 = vrot.lane.b32.xlu0 %v725_v56, %s1261_s26  ;;  %v1104_v58 = vpop.f32.mrb[13].mxu1 }
 0x11a   : > { %v730_v59 = vpop.f32.mrb[14].mxu1 }
 0x11b   : > { %753 = vrot.lane.b32.xlu1 %v730_v59, %s1261_s26  ;;  %v1107_v60 = vpop.f32.mrb[15].mxu1 }
 0x16a   : > { %v448_v61 = vpop.permute.xlu0 %447 }
 0x16b   : > { %v460_v63 = vpop.permute.xlu1 %459 }
 0x16c   : > { %v469_v6 = vsel %vm468_vm3, %v448_v61, %v460_v63 }
 0x16d   : > { %v548_v8 = vadd.f32 %v547_v43, %v469_v6 }
 0x16e   : > { %v450_v62 = vpop.permute.xlu0 %449 }
 0x172   : > { %v452_v0 = vpop.permute.xlu1 %451  ;;  %v462_v1 = vpop.permute.xlu0 %461 }
 0x173   : > { %v470_v7 = vsel %vm468_vm3, %v450_v62, %v462_v1 }
 0x174   : > { %v553_v10 = vadd.f32 %v552_v47, %v470_v7 }
 0x176   : > { %v464_v3 = vpop.permute.xlu1 %463 }
 0x177   : > { %v471_v13 = vsel %vm468_vm3, %v452_v0, %v464_v3 }
 0x178   : > { %v558_v17 = vadd.f32 %v557_v51, %v471_v13 }
 0x17a   : > { %v738_v2 = vpop.permute.xlu0 %737 }
 0x17f   : > { %v740_v5 = vpop.permute.xlu1 %739 }
 0x183   : > { %v742_v4 = vpop.permute.xlu0 %741 }
 0x188   : > { %v750_v9 = vpop.permute.xlu1 %749 }
 0x189   : > { %v752_v11 = vpop.permute.xlu0 %751  ;;  %v759_v12 = vsel %vm758_vm4, %v738_v2, %v750_v9  ;;  %768 = sbr.rel (%p936_p5) target bundleno = 402 (0x192), region = 40 }
 0x18a   : > { %v760_v14 = vsel %vm758_vm4, %v740_v5, %v752_v11  ;;  %v762_v15 = vadd.f32 %v759_v12, %v548_v8 }
 0x18b   : > { %v763_v16 = vadd.f32 %v760_v14, %v553_v10 }
 0x18c   : > { %769 = vst [vmem:[#allocation2] sm:$0xff] (!%p936_p5), %v762_v15 }
 0x18d   : > { %v754_v18 = vpop.permute.xlu1 %753  ;;  %770 = vst [vmem:[#allocation2 + $0x8] sm:$0xff] (!%p936_p5), %v763_v16 }
 0x18e   : > { %v761_v19 = vsel %vm758_vm4, %v742_v4, %v754_v18 }
 0x18f   : > { %v764_v20 = vadd.f32 %v761_v19, %v558_v17 }
 0x191   : > { %771 = vst [vmem:[#allocation2 + $0x10] sm:$0xf] %v764_v20 }
 0x192 PF: > { %p937_p6 = scmp.eq.s32.totalorder %s1247_s15, 0 }
 0x194   : > { %775 = sbr.rel (%p937_p6) target bundleno = 412 (0x19c), region = 44 }
 0x195   : > { %v776_v21 = vld [vmem:[#allocation2] sm:$0xff] (!%p937_p6) }
 0x196   : > { %v777_v22 = vld [vmem:[#allocation2 + $0x8] sm:$0xff] (!%p937_p6)  ;;  %v779_v24 = vmax.f32 (!%p937_p6), %v776_v21, %v762_v15 }
 0x197   : > { %v780_v25 = vmax.f32 (!%p937_p6), %v777_v22, %v763_v16 }
 0x198   : > { %v778_v23 = vld [vmem:[#allocation2 + $0x10] sm:$0xf] (!%p937_p6)  ;;  %782 = vst [vmem:[#allocation2] sm:$0xff] (!%p937_p6), %v779_v24 }
 0x199   : > { %v781_v26 = vmax.f32 (!%p937_p6), %v778_v23, %v764_v20  ;;  %783 = vst [vmem:[#allocation2 + $0x8] sm:$0xff] (!%p937_p6), %v780_v25 }
 0x19b   : > { %784 = vst [vmem:[#allocation2 + $0x10] sm:$0xf] %v781_v26 }
 0x19c PF: > { %p938_p7 = scmp.ne.s32.totalorder %s1247_s15, 3 }
 0x19d   : > { %v792_v27 = vld [vmem:[%s1512_s3] sm:$0xff] (!%p938_p7)  ;;  %v794_v28 = vld [vmem:[%s1512_s3 + $0x10] sm:$0xf] (!%p938_p7)  ;;  %v1262_v29 = vmov (!%p938_p7), 0   ;;  %v793_v30 = vld [vmem:[%s1512_s3 + $0x8] sm:$0xff] (!%p938_p7) }
 0x19e   : > { %788 = sbr.rel (%p938_p7) target bundleno = 550 (0x226), region = 48  ;;  %1201 = vset.pattern.permute.xlu0 (!%p938_p7), %v1262_v29  ;;  %1202 = vset.pattern.permute.xlu1 (!%p938_p7), %v1262_v29 }
 0x19f   : > { %797 = vperm.xlu0 (!%p938_p7), %1201, %v792_v27   ;;  %807 = vperm.xlu1 (!%p938_p7), %1202, %v794_v28  }
 0x1a0   : > { %v789_v31 = vld [vmem:[#allocation2] sm:$0xff] (!%p938_p7) }
 0x1a1   : > { %v790_v37 = vld [vmem:[#allocation2 + $0x8] sm:$0xff] (!%p938_p7) }
 0x1a2   : > { %v791_v32 = vld [vmem:[#allocation2 + $0x10] sm:$0xf] (!%p938_p7) }
 0x1a3   : > { %802 = vperm.xlu0 (!%p938_p7), %1201, %v793_v30  }
 0x21e   : > { %v798_v33 = vpop.permute.xlu0 %797  ;;  %v808_v34 = vpop.permute.xlu1 %807 }
 0x21f   : > { %v810_v35 = vadd.f32 %v798_v33, %v789_v31  ;;  %v812_v36 = vadd.f32 %v808_v34, %v791_v32 }
 0x221   : > { %813 = vst [vmem:[#allocation2] sm:$0xff] %v810_v35  ;;  %815 = vst [vmem:[#allocation2 + $0x10] sm:$0xf] %v812_v36 }
 0x222   : > { %v803_v38 = vpop.permute.xlu0 %802 }
 0x223   : > { %v811_v39 = vadd.f32 %v803_v38, %v790_v37 }
 0x225   : > { %814 = vst [vmem:[#allocation2 + $0x8] sm:$0xff] %v811_v39 }
 0x226 PF: > { %p1474_p8 = scmp.eq.s32.totalorder %s904_s18, 3  ;;  %s1263_s7 = smov [#allocation2]  }
 0x227   : > { %s824_s8 = sshll.u32 %s1263_s7, 4  ;;  %s825_s8 = int_to_ptr.vmem [resolvable:$true] %s824_s8 }
 0x228   : > { %s1203_s9 = scalar_lea.vmem %s825_s8, 384  ;;  %p1210_p12 = scmp.lt.s32.totalorder %s825_s8, %s825_s8 }
 0x229   : > { %p1204_p9 = scmp.ne.s32.totalorder %s825_s8, %s1203_s9  ;;  %p1211_p13 = scmp.lt.s32.totalorder %s1203_s9, %s1203_s9 }
 0x22b   : > { %p1205_p10 = pnand %p1204_p9, %p1474_p8  ;;  %p1212_p0 = por %p1211_p13, %p1210_p12 }
 0x22d   : > { %p1206_p11 = pneg %p1205_p10 }
 0x22f   : > { %p1213_p1 = pnand %p1212_p0, %p1206_p11 }
 0x231   : > { %1216 = shalt.err (!%p1213_p1)
}
 0x232   : > { %s1217_s18 = scalar_lea.hbm %s1513_s4, 384 }
 0x233   : > { %p1218_p2 = scmp.ne.s32.totalorder %s1513_s4, %s1217_s18  ;;  %p1223_p5 = scmp.lt.u32.totalorder %s1217_s18, %s1513_s4 }
 0x235   : > { %p1219_p3 = pnand %p1218_p2, %p1474_p8 }
 0x237   : > { %p1220_p4 = pneg %p1219_p3 }
 0x239   : > { %p1225_p6 = pnand %p1223_p5, %p1220_p4 }
 0x23b   : > { %1228 = shalt.err (!%p1225_p6)
}
 0x23c   : > { %s1264_s21 = smov 128   ;;  %s1265_s22 = smov 8  }
 0x23d   : > { %1163 = dma.vmem_to_hbm [thread:$0]  (%p1474_p8), %s825_s8, 384, %s1513_s4, [#allocation3], %s1264_s21, %s1264_s21, %s1265_s22  }
 0x23e   : > { %1242 = dma.done.wait (%p1474_p8), [#allocation3], 384  }
 0x23f   : > { %1244 = vsyncadd (%p1474_p8), [#allocation3], 4294966912 }
 0x240 PF: > { %s15_s17 = sadd.s32 1, %s1255_s17   ;;  %s1515_s15 = smov %s1251_s16 }
 0x241   : > { %p12_p7 = scmp.ge.s32.totalorder %s15_s17, 6   ;;  %s1516_s16 = smov %s1518_s19 }
 0x243   :  { %14 = sbr.rel (!%p12_p7) target bundleno = 2 (0x2), region = 81 }
 0x24a   :  { %840 = vsyncpa [#allocation3], 1 }
 0x24b   :  { %842 = vsyncpa [#allocation3 + $0x1], 1 }

</bundles_post_ra>
